<compile_context>
chip_gen: v5e
topology: v5e:2x2
jax: 0.10.0
libtpu: 0.0.40
codegen_flags: <defaults>
</compile_context>

<pallas_src>
import functools
import math

import jax
import jax.numpy as jnp
from jax import lax
from jax.experimental import pallas as pl
from jax.experimental.pallas import tpu as pltpu

_VMEM_LIMIT = 32 * 1024 * 1024


# ----------------------------------------------------------------------------
# Pallas kernels
# ----------------------------------------------------------------------------
def _matmul_affine_kernel(x_ref, w_ref, scale_ref, shift_ref, o_ref, *,
                          apply_relu, has_scale):
    """o = relu?( (x @ w) [* scale] + shift )  -- bf16 GEMM, f32 accumulate/affine."""
    y = jnp.dot(x_ref[...], w_ref[...], preferred_element_type=jnp.float32)
    if has_scale:
        y = y * scale_ref[...]
    y = y + shift_ref[...]
    if apply_relu:
        y = jnp.maximum(y, 0.0)
    o_ref[...] = y.astype(o_ref.dtype)


def pallas_matmul_affine(x, w, scale, shift, relu, has_scale=True,
                         out_dtype=jnp.float32):
    """x: (M, K), w: (K, N), scale/shift: (N,). Returns (M, N) out_dtype."""
    M, K = x.shape
    _, N = w.shape
    if scale is None:
        scale = jnp.ones((N,), jnp.float32)
    # 2 parallel M-steps for the bigger GEMMs (keeps both v7x TensorCores busy),
    # otherwise a single full-M block (minimal per-grid-step overhead on v5e/v6e).
    if M >= 256 and M % 2 == 0 and (M // 2) % 8 == 0:
        tm = M // 2
    else:
        tm = M
    kern = functools.partial(_matmul_affine_kernel, apply_relu=relu,
                             has_scale=has_scale)
    return pl.pallas_call(
        kern,
        out_shape=jax.ShapeDtypeStruct((M, N), out_dtype),
        grid=(M // tm,),
        in_specs=[
            pl.BlockSpec((tm, K), lambda i: (i, 0)),
            pl.BlockSpec((K, N), lambda i: (0, 0)),
            pl.BlockSpec((1, N), lambda i: (0, 0)),
            pl.BlockSpec((1, N), lambda i: (0, 0)),
        ],
        out_specs=pl.BlockSpec((tm, N), lambda i: (i, 0)),
        compiler_params=pltpu.CompilerParams(
            dimension_semantics=("parallel",),
            vmem_limit_bytes=_VMEM_LIMIT),
    )(
        x.astype(jnp.bfloat16),
        w.astype(jnp.bfloat16),
        scale.reshape(1, N).astype(jnp.float32),
        shift.reshape(1, N).astype(jnp.float32),
    )


def _pfn_kernel(f_ref, w_ref, scale_ref, shift_ref, o_ref, *, num_pillars, num_points):
    """PillarVFE PFN: one (P*T,10)@(10,64) GEMM + BN + ReLU, then max over points."""
    y = jnp.dot(f_ref[...], w_ref[...], preferred_element_type=jnp.float32)  # (P*T, 64)
    y = jnp.maximum(y * scale_ref[...] + shift_ref[...], 0.0)
    y = y.reshape(num_pillars, num_points, y.shape[-1])                      # (P, T, 64)
    o_ref[...] = jnp.max(y, axis=1)                                          # (P, 64)


def pallas_pfn(features, w, scale, shift):
    """features: (P, T, 10), w: (10, 64). Returns pillar features (P, 64) f32."""
    P, T, Cin = features.shape
    N = w.shape[1]
    kern = functools.partial(_pfn_kernel, num_pillars=P, num_points=T)
    return pl.pallas_call(
        kern,
        out_shape=jax.ShapeDtypeStruct((P, N), jnp.float32),
    )(
        features.reshape(P * T, Cin).astype(jnp.bfloat16),
        w.astype(jnp.bfloat16),
        scale.reshape(1, N).astype(jnp.float32),
        shift.reshape(1, N).astype(jnp.float32),
    )


def _decode_kernel(bp_ref, rot_ref, scale_ref, shift_ref, o_ref, *, W):
    """generate_predicted_boxes decode, channel-major lane-dense layout.

    bp_ref:  (1, 8, HW)   raw reg channels [dx, dy, hei, h, w, l, sin, cos]
    rot_ref: (1, 1, HW)   precomputed atan2(sin, cos)
    scale/shift: (1, 7, 1) per-output-channel affine
    o_ref:   (1, 7, HW)   [xs, ys, hei, dh, dw, dl, rot]
    """
    C = o_ref.shape[1]
    HW = o_ref.shape[2]
    bp = bp_ref[...]
    ch = lax.broadcasted_iota(jnp.int32, (1, C, HW), 1)
    lane = lax.broadcasted_iota(jnp.int32, (1, C, HW), 2)
    xs_grid = (lane % W).astype(jnp.float32)
    ys_grid = (lane // W).astype(jnp.float32)
    grid_add = jnp.where(ch == 0, xs_grid, jnp.where(ch == 1, ys_grid, 0.0))
    y = (bp[:, :C, :] + grid_add) * scale_ref[...] + shift_ref[...]
    rot_b = jnp.broadcast_to(rot_ref[...], y.shape)
    o_ref[...] = jnp.where(ch == C - 1, rot_b, y)


def pallas_decode(bp8, rot, W, osf, voxel_size, pc_range):
    """bp8: (B, HW, 8), rot: (B, HW, 1). Returns (B, HW, 7) f32."""
    B, HW, _ = bp8.shape
    osf = float(osf)
    vx, vy, vz = (float(v) for v in voxel_size)
    px, py, pz = (float(p) for p in pc_range[:3])
    scale = jnp.array([osf * vx, osf * vy, osf * vz,
                       osf * vx, osf * vy, osf * vz, 0.0],
                      jnp.float32).reshape(1, 7, 1)
    shift = jnp.array([px, py, pz, 0.0, 0.0, 0.0, 0.0],
                      jnp.float32).reshape(1, 7, 1)
    bp_t = bp8.astype(jnp.float32).transpose(0, 2, 1)    # (B, 8, HW) lane-dense
    rot_t = rot.astype(jnp.float32).transpose(0, 2, 1)   # (B, 1, HW)
    out = pl.pallas_call(
        functools.partial(_decode_kernel, W=W),
        out_shape=jax.ShapeDtypeStruct((B, 7, HW), jnp.float32),
        grid=(B,),
        in_specs=[
            pl.BlockSpec((1, 8, HW), lambda b: (b, 0, 0)),
            pl.BlockSpec((1, 1, HW), lambda b: (b, 0, 0)),
            pl.BlockSpec((1, 7, 1), lambda b: (0, 0, 0)),
            pl.BlockSpec((1, 7, 1), lambda b: (0, 0, 0)),
        ],
        out_specs=pl.BlockSpec((1, 7, HW), lambda b: (b, 0, 0)),
        compiler_params=pltpu.CompilerParams(
            dimension_semantics=("parallel",),
            vmem_limit_bytes=_VMEM_LIMIT),
    )(bp_t, rot_t, scale, shift)
    return out.transpose(0, 2, 1)                        # (B, HW, 7)


# ----------------------------------------------------------------------------
# Conv helpers (channels-last im2col glue in plain JAX, GEMM in Pallas)
# ----------------------------------------------------------------------------
def conv2d(x, w, scale, shift, stride=1, pad=1, relu=True, out_dtype=jnp.bfloat16):
    """PyTorch-semantics Conv2d on NHWC activations. w: (Cout,Cin,kh,kw)."""
    B, H, W, C = x.shape
    Cout, Cin, kh, kw = w.shape
    xb = x.astype(jnp.bfloat16)
    xp = jnp.pad(xb, ((0, 0), (pad, pad), (pad, pad), (0, 0)))
    Ho = (H + 2 * pad - kh) // stride + 1
    Wo = (W + 2 * pad - kw) // stride + 1
    cols = []
    for i in range(kh):
        for j in range(kw):
            cols.append(xp[:, i:i + stride * (Ho - 1) + 1:stride,
                           j:j + stride * (Wo - 1) + 1:stride, :])
    # (B, Ho, Wo, kh*kw, C): channel-last, no feature-map transpose needed.
    patches = jnp.stack(cols, axis=3)
    Xc = patches.reshape(B * Ho * Wo, kh * kw * C)
    Wm = w.transpose(2, 3, 1, 0).reshape(kh * kw * Cin, Cout)   # K order (kh, kw, Cin)
    y = pallas_matmul_affine(Xc, Wm, scale, shift, relu, out_dtype=out_dtype)
    return y.reshape(B, Ho, Wo, Cout)


def conv_transpose2d(x, w, scale, shift, k, relu=True, out_dtype=jnp.bfloat16):
    """ConvTranspose2d (kernel_size == stride == k) on NHWC. w: (Cin, Cout, k, k)."""
    B, H, W, C = x.shape
    Cout = w.shape[1]
    Xc = x.reshape(B * H * W, C)
    Wm = w.transpose(0, 2, 3, 1).reshape(C, k * k * Cout)       # N order (kh, kw, Cout)
    scale_r = jnp.tile(scale, k * k)
    shift_r = jnp.tile(shift, k * k)
    y = pallas_matmul_affine(Xc, Wm, scale_r, shift_r, relu, out_dtype=out_dtype)
    y = y.reshape(B, H, W, k, k, Cout).transpose(0, 1, 3, 2, 4, 5)
    return y.reshape(B, H * k, W * k, Cout)


# ----------------------------------------------------------------------------
# Deterministic parameter construction
# ----------------------------------------------------------------------------
def _make_bn(key, c, eps=1e-3):
    k1, k2 = jax.random.split(key)
    gamma = 1.0 + 0.05 * jax.random.normal(k1, (c,), jnp.float32)
    beta = 0.05 * jax.random.normal(k2, (c,), jnp.float32)
    mean = jnp.zeros((c,), jnp.float32)
    var = jnp.ones((c,), jnp.float32)
    scale = gamma / jnp.sqrt(var + eps)
    shift = beta - mean * scale
    return scale, shift


def _conv_init(key, shape):
    fan_in = shape[1] * shape[2] * shape[3]
    bound = 1.0 / math.sqrt(fan_in)
    return jax.random.uniform(key, shape, jnp.float32, -bound, bound)


def init_params(key, cfg):
    keys = iter(jax.random.split(key, 64))
    nk = lambda: next(keys)
    params = {}

    # PillarVFE PFN layer: Linear(10 -> 64, bias=False) + BN1d + ReLU
    params["pfn_w"] = 0.1 * jax.random.normal(nk(), (10, 64), jnp.float32)
    params["pfn_bn"] = _make_bn(nk(), 64)

    # BaseBEVBackbone
    num_filters = cfg["num_filters"]
    layer_strides = cfg["layer_strides"]
    layer_nums = cfg["layer_nums"]
    up_filters = cfg["num_upsample_filter"]
    up_strides = cfg["upsample_strides"]
    c_in = 64
    blocks = []
    for lvl in range(len(num_filters)):
        cin = c_in if lvl == 0 else num_filters[lvl - 1]
        cout = num_filters[lvl]
        level = [{"w": _conv_init(nk(), (cout, cin, 3, 3)),
                  "stride": layer_strides[lvl], "bn": _make_bn(nk(), cout)}]
        for _ in range(layer_nums[lvl]):
            level.append({"w": _conv_init(nk(), (cout, cout, 3, 3)),
                          "stride": 1, "bn": _make_bn(nk(), cout)})
        blocks.append(level)
    params["blocks"] = blocks

    deblocks = []
    for lvl in range(len(num_filters)):
        k = up_strides[lvl]
        w = _conv_init(nk(), (num_filters[lvl], up_filters[lvl], k, k))
        deblocks.append({"w": w, "k": k, "bn": _make_bn(nk(), up_filters[lvl])})
    params["deblocks"] = deblocks

    # Heads (1x1 convs). cls bias = -log((1-pi)/pi), reg weight ~ N(0, 0.001).
    head_in = sum(up_filters)                       # 128 * 3 (no shrink header)
    na = cfg["anchor_number"]
    bound = 1.0 / math.sqrt(head_in)
    params["cls_w"] = jax.random.uniform(nk(), (na, head_in, 1, 1), jnp.float32, -bound, bound)
    params["cls_b"] = jnp.full((na,), -math.log((1.0 - 0.01) / 0.01), jnp.float32)
    params["reg_w"] = 0.001 * jax.random.normal(nk(), (8 * na, head_in, 1, 1), jnp.float32)
    params["reg_b"] = jax.random.uniform(nk(), (8 * na,), jnp.float32, -bound, bound)
    return params


# ----------------------------------------------------------------------------
# CenterPoint forward
# ----------------------------------------------------------------------------
def center_point_forward(params, cfg, voxel_features, voxel_coords, voxel_num_points):
    vs = cfg["voxel_size"]
    pcr = cfg["lidar_range"]
    B, ny, nx = cfg["batch_size"], cfg["ny"], cfg["nx"]

    # ---------------- PillarVFE: feature augmentation (glue) ----------------
    vf = voxel_features.astype(jnp.float32)                      # (P, T, 4)
    T = vf.shape[1]
    npts = jnp.maximum(voxel_num_points.astype(jnp.float32), 1.0)  # guard empty pillars
    points_mean = vf[:, :, :3].sum(axis=1, keepdims=True) / npts[:, None, None]
    f_cluster = vf[:, :, :3] - points_mean
    coords_f = voxel_coords.astype(jnp.float32)
    x_off = vs[0] / 2.0 + pcr[0]
    y_off = vs[1] / 2.0 + pcr[1]
    z_off = vs[2] / 2.0 + pcr[2]
    fcx = vf[:, :, 0] - (coords_f[:, 3:4] * vs[0] + x_off)
    fcy = vf[:, :, 1] - (coords_f[:, 2:3] * vs[1] + y_off)
    fcz = vf[:, :, 2] - (coords_f[:, 1:2] * vs[2] + z_off)
    f_center = jnp.stack([fcx, fcy, fcz], axis=-1)
    feats = jnp.concatenate([vf, f_cluster, f_center], axis=-1)  # (P, T, 10)
    mask = (jnp.arange(T)[None, :] < voxel_num_points[:, None]).astype(jnp.float32)
    feats = feats * mask[..., None]

    # ---------------- PFN layer (Pallas: GEMM + BN + ReLU + max) ------------
    pfn_scale, pfn_shift = params["pfn_bn"]
    pillar_features = pallas_pfn(feats, params["pfn_w"], pfn_scale, pfn_shift)  # (P, 64)

    # ---------------- PointPillarScatter (index scatter, plain JAX) ---------
    flat_idx = (voxel_coords[:, 0] * (ny * nx)
                + voxel_coords[:, 2] * nx + voxel_coords[:, 3]).astype(jnp.int32)
    canvas = jnp.zeros((B * ny * nx, 64), jnp.float32).at[flat_idx].set(pillar_features)
    x = canvas.reshape(B, ny, nx, 64)                            # NHWC, no transpose

    # ---------------- BaseBEVBackbone (NHWC throughout) ---------------------
    ups = []
    for lvl, level in enumerate(params["blocks"]):
        for layer in level:
            s, sh = layer["bn"]
            x = conv2d(x, layer["w"], s, sh, stride=layer["stride"], pad=1, relu=True)
        db = params["deblocks"][lvl]
        s, sh = db["bn"]
        ups.append(conv_transpose2d(x, db["w"], s, sh, db["k"], relu=True))
    spatial_features_2d = jnp.concatenate(ups, axis=-1)          # (B, H, W, 384) bf16

    # ---------------- Heads: fused cls+reg 1x1 conv, lane-dense GEMM --------
    na = cfg["anchor_number"]
    n_heads = 9 * na                                             # na + 8*na
    head_w = jnp.concatenate([params["cls_w"], params["reg_w"]],
                             axis=0).reshape(n_heads, -1).T      # (384, 18)
    head_b = jnp.concatenate([params["cls_b"], params["reg_b"]], axis=0)
    n_pad = 128                                                  # lane-dense output
    w_pad = jnp.zeros((head_w.shape[0], n_pad), jnp.float32).at[:, :n_heads].set(head_w)
    b_pad = jnp.zeros((n_pad,), jnp.float32).at[:n_heads].set(head_b)
    Bh, H, W, Cfeat = spatial_features_2d.shape
    Xh = spatial_features_2d.reshape(Bh * H * W, Cfeat)
    heads = pallas_matmul_affine(Xh, w_pad, None, b_pad, relu=False,
                                 has_scale=False, out_dtype=jnp.float32)
    heads = heads.reshape(Bh, H, W, n_pad)
    cls_nhwc = heads[..., :na]                                   # (B, H, W, na)
    bbox_nhwc = heads[..., na:n_heads]                           # (B, H, W, 8*na)
    cls = cls_nhwc.transpose(0, 3, 1, 2)                         # NCHW module outputs
    bbox = bbox_nhwc.transpose(0, 3, 1, 2)

    # ---------------- generate_predicted_boxes -------------------------------
    box_preds = bbox_nhwc.reshape(Bh, H * W, 8 * na)
    bp8 = box_preds[:, :, :8]
    # TODO(synk): atan2 computed in plain JAX (Mosaic atan2 lowering not guaranteed).
    rot = jnp.arctan2(bp8[:, :, 6:7], bp8[:, :, 7:8])
    reg_preds = pallas_decode(bp8, rot, W, cfg["out_size_factor"], vs, pcr)

    return {"cls_preds": cls, "reg_preds": reg_preds, "bbox_preds": bbox}


# ----------------------------------------------------------------------------
# main
# ----------------------------------------------------------------------------
if __name__ == "__main__":
    cfg = {
        "batch_size": 2,
        "voxel_size": [0.4, 0.4, 4.0],
        "lidar_range": [-6.4, -6.4, -3.0, 6.4, 6.4, 1.0],
        "ny": 32, "nx": 32,
        "out_size_factor": 2,
        "anchor_number": 2,
        "layer_nums": [1, 1, 1],
        "layer_strides": [2, 2, 2],
        "num_filters": [64, 128, 256],
        "upsample_strides": [1, 2, 4],
        "num_upsample_filter": [128, 128, 128],
    }

    key = jax.random.PRNGKey(0)
    k_coord, k_np, k_pts, k_z, k_int, k_param = jax.random.split(key, 6)

    B, ny, nx = cfg["batch_size"], cfg["ny"], cfg["nx"]
    P, T = 40, 8                                    # pillars, max points per pillar
    vs, pcr = cfg["voxel_size"], cfg["lidar_range"]

    # distinct (batch, y, x) pillar coordinates
    perm = jax.random.permutation(k_coord, B * ny * nx)[:P]
    b_idx = perm // (ny * nx)
    rem = perm % (ny * nx)
    yv = rem // nx
    xv = rem % nx
    voxel_coords = jnp.stack(
        [b_idx, jnp.zeros_like(b_idx), yv, xv], axis=1).astype(jnp.int32)   # (P, 4)

    voxel_num_points = jax.random.randint(k_np, (P,), 1, T + 1).astype(jnp.int32)

    cx = xv.astype(jnp.float32) * vs[0] + vs[0] / 2 + pcr[0]
    cy = yv.astype(jnp.float32) * vs[1] + vs[1] / 2 + pcr[1]
    jitter = jax.random.uniform(k_pts, (P, T, 2), jnp.float32, -0.2, 0.2)
    px = cx[:, None] + jitter[..., 0]
    py = cy[:, None] + jitter[..., 1]
    pz = jax.random.uniform(k_z, (P, T), jnp.float32, -3.0, 1.0)
    inten = jax.random.uniform(k_int, (P, T), jnp.float32, 0.0, 1.0)
    voxel_features = jnp.stack([px, py, pz, inten], axis=-1)                # (P, T, 4)
    pad_mask = (jnp.arange(T)[None, :] < voxel_num_points[:, None]).astype(jnp.float32)
    voxel_features = voxel_features * pad_mask[..., None]

    params = init_params(k_param, cfg)

    out = center_point_forward(params, cfg, voxel_features, voxel_coords, voxel_num_points)
    out = jax.block_until_ready(out)

    assert out["cls_preds"].shape == (B, cfg["anchor_number"], 16, 16)
    assert out["bbox_preds"].shape == (B, 8 * cfg["anchor_number"], 16, 16)
    assert out["reg_preds"].shape == (B, 16 * 16, 7)
    print("KERNEL_OK")
</pallas_src>

<mosaic_0001>
module attributes {stable_mosaic.version = 11 : i64} {
  func.func @_pfn_kernel(%arg0: memref<320x10xbf16, #tpu.memory_space<vmem>>, %arg1: memref<10x64xbf16, #tpu.memory_space<vmem>>, %arg2: memref<1x64xf32, #tpu.memory_space<vmem>>, %arg3: memref<1x64xf32, #tpu.memory_space<vmem>>, %arg4: memref<40x64xf32, #tpu.memory_space<vmem>>) attributes {dimension_semantics = [], scalar_prefetch = 0 : i64, scratch_operands = 0 : i64, tpu.core_type = #tpu.core_type<tc>} {
    %c0 = arith.constant 0 : index
    %c0_0 = arith.constant 0 : index
    %0 = vector.load %arg0[%c0, %c0_0] : memref<320x10xbf16, #tpu.memory_space<vmem>>, vector<320x10xbf16>
    %c0_1 = arith.constant 0 : index
    %c0_2 = arith.constant 0 : index
    %1 = vector.load %arg1[%c0_1, %c0_2] : memref<10x64xbf16, #tpu.memory_space<vmem>>, vector<10x64xbf16>
    %cst = arith.constant dense<0.000000e+00> : vector<320x64xf32>
    %2 = tpu.matmul %0, %1, %cst {dimension_numbers = #tpu.dot_dimension_numbers<[1], [0], [0], [1], [0, 0, 1, 1], [], []>} : vector<320x10xbf16>, vector<10x64xbf16>, vector<320x64xf32> -> vector<320x64xf32>
    %c0_3 = arith.constant 0 : index
    %c0_4 = arith.constant 0 : index
    %3 = vector.load %arg2[%c0_3, %c0_4] : memref<1x64xf32, #tpu.memory_space<vmem>>, vector<1x64xf32>
    %4 = vector.broadcast %3 : vector<1x64xf32> to vector<320x64xf32>
    %5 = arith.mulf %2, %4 : vector<320x64xf32>
    %c0_5 = arith.constant 0 : index
    %c0_6 = arith.constant 0 : index
    %6 = vector.load %arg3[%c0_5, %c0_6] : memref<1x64xf32, #tpu.memory_space<vmem>>, vector<1x64xf32>
    %7 = vector.broadcast %6 : vector<1x64xf32> to vector<320x64xf32>
    %8 = arith.addf %5, %7 : vector<320x64xf32>
    %cst_7 = arith.constant 0.000000e+00 : f32
    %9 = vector.broadcast %cst_7 : f32 to vector<320x64xf32>
    %10 = arith.maximumf %8, %9 : vector<320x64xf32>
    %11 = vector.shape_cast %10 : vector<320x64xf32> to vector<40x8x64xf32>
    %cst_8 = arith.constant dense<0xFF800000> : vector<40x64xf32>
    %12 = vector.multi_reduction <maximumf>, %11, %cst_8 [1] : vector<40x8x64xf32> to vector<40x64xf32>
    %c0_9 = arith.constant 0 : index
    %c0_10 = arith.constant 0 : index
    %13 = vector.load %arg4[%c0_9, %c0_10] : memref<40x64xf32, #tpu.memory_space<vmem>>, vector<40x64xf32>
    tpu.vector_store %arg4[%c0_9, %c0_10], %12 {strides = array<i32>} : memref<40x64xf32, #tpu.memory_space<vmem>>, vector<40x64xf32>,
    return
  }
}

</mosaic_0001>

<bundles_post_ra>
// kernel: tpu_custom_call.1
= control target key start
LH: loop header
LB: loop body
LE: loop exit
PB: predicated region body
PF: predicated region fallthrough
CT: control target
= control target key end

     0   :  { %vm227_vm0 = vcmask 1044480   ;;  %vm166_vm1 = vcmask 80896   ;;  %s1353_s0 = inlined_call_operand.vmem [shape: bf16[320,10], index: 0, kind: input, shape index: {}]   ;;  %s1354_s1 = inlined_call_operand.vmem [shape: bf16[10,64], index: 1, kind: input, shape index: {}]   ;;  %s1355_s2 = inlined_call_operand.vmem [shape: f32[1,64], index: 2, kind: input, shape index: {}]   ;;  %s1356_s3 = inlined_call_operand.vmem [shape: f32[1,64], index: 3, kind: input, shape index: {}]   ;;  %s1357_s4 = inlined_call_operand.hbm [shape: f32[40,64], index: 4, kind: output, shape index: {}]  }
   0x1   :  { %v941_v0 = vld [vmem:[%s1354_s1] sm:$0xf]  ;;  %v983_v1 = vld [vmem:[%s1354_s1] sm:$0x10]  ;;  %v968_v5 = vld [vmem:[%s1353_s0 + $0x28] sm:$0xff] }
   0x2   :  { %v942_v2 = vor.u32 %v983_v1, %v941_v0  ;;  %v963_v3 = vld [vmem:[%s1353_s0] sm:$0xff]  ;;  %v973_v6 = vld [vmem:[%s1353_s0 + $0x50] sm:$0xff]  ;;  %v978_v7 = vld [vmem:[%s1353_s0 + $0x78] sm:$0xff] }
   0x4   :  { %v229_v4 = vsel %vm227_vm0, %v942_v2, 0 }
   0x5   :  { %238 = vmatpush.bf16.msra.mxu0 %v229_v4  ;;  %984 = vmatpush.bf16.msra.mxu1 %v229_v4 }
   0x6   :  { %9 = vsyncpa [#allocation3], 0  ;;  %985 = vmatpush.bf16.msra.mxu2 %v229_v4  ;;  %986 = vmatpush.bf16.msra.mxu3 %v229_v4  ;;  %v964_v8 = vld [vmem:[%s1353_s0 + $0x8] sm:$0xff]  ;;  %v969_v9 = vld [vmem:[%s1353_s0 + $0x30] sm:$0xff]  ;;  %vm468_vm2 = vcmask 523264   ;;  %vm789_vm3 = vcmask 1041409  }
   0x7   :  { %v974_v10 = vld [vmem:[%s1353_s0 + $0x58] sm:$0xff]  ;;  %v979_v11 = vld [vmem:[%s1353_s0 + $0x80] sm:$0xff]  ;;  %v965_v12 = vld [vmem:[%s1353_s0 + $0x10] sm:$0xff]  ;;  %vm791_vm4 = vcmask 1042434   ;;  %vm793_vm5 = vcmask 1043459   ;;  %vm795_vm6 = vcmask 1044484  }
   0x8   :  { %943 = vmatmul.msk.bf16.vlgmr.msra.gmra.mxu0 %vm166_vm1, %v963_v3  ;;  %948 = vmatmul.msk.bf16.vlgmr.msra.gmra.mxu1 %vm166_vm1, %v968_v5  ;;  %v970_v13 = vld [vmem:[%s1353_s0 + $0x38] sm:$0xff]  ;;  %v975_v14 = vld [vmem:[%s1353_s0 + $0x60] sm:$0xff]  ;;  %v980_v15 = vld [vmem:[%s1353_s0 + $0x88] sm:$0xff]  ;;  %vm797_vm7 = vcmask 1045509   ;;  %vm799_vm8 = vcmask 1046534   ;;  %vm801_vm9 = vcmask 1047559  }
   0x9   :  { %953 = vmatmul.msk.bf16.vlgmr.msra.gmra.mxu2 %vm166_vm1, %v973_v6  ;;  %958 = vmatmul.msk.bf16.vlgmr.msra.gmra.mxu3 %vm166_vm1, %v978_v7  ;;  %v966_v16 = vld [vmem:[%s1353_s0 + $0x18] sm:$0xff]  ;;  %v971_v17 = vld [vmem:[%s1353_s0 + $0x40] sm:$0xff]  ;;  %v976_v18 = vld [vmem:[%s1353_s0 + $0x68] sm:$0xff]  ;;  %s847_s10 = sshll.u32 %s1357_s4, 4  ;;  %s1019_s4 = smov 128   ;;  %s848_s10 = int_to_ptr.hbm [resolvable:$true] %s847_s10 }
   0xa   :  { %v981_v19 = vld [vmem:[%s1353_s0 + $0x90] sm:$0xff]  ;;  %v967_v20 = vld [vmem:[%s1353_s0 + $0x20] sm:$0xff]  ;;  %v972_v21 = vld [vmem:[%s1353_s0 + $0x48] sm:$0xff]  ;;  %s1020_s11 = smov 8  }
   0xb   :  { %v977_v22 = vld [vmem:[%s1353_s0 + $0x70] sm:$0xff]  ;;  %v982_v23 = vld [vmem:[%s1353_s0 + $0x98] sm:$0xff]  ;;  %v1135_v24 = vld [vmem:[%s1355_s2] ss:$0 sm:$0xff]  ;;  %s1018_s0 = smov [#allocation2]  }
   0xc   :  { %v1140_v25 = vld [vmem:[%s1356_s3] ss:$0 sm:$0xff]  ;;  %s845_s2 = sshll.u32 %s1018_s0, 4  ;;  %s846_s2 = int_to_ptr.vmem [resolvable:$true] %s845_s2 }
  0x18   :  { %944 = vmatmul.msk.bf16.gmra.mxu0 %vm166_vm1, %v964_v8  ;;  %949 = vmatmul.msk.bf16.gmra.mxu1 %vm166_vm1, %v969_v9 }
  0x19   :  { %954 = vmatmul.msk.bf16.gmra.mxu2 %vm166_vm1, %v974_v10  ;;  %959 = vmatmul.msk.bf16.gmra.mxu3 %vm166_vm1, %v979_v11 }
  0x28   :  { %945 = vmatmul.msk.bf16.gmra.mxu0 %vm166_vm1, %v965_v12  ;;  %950 = vmatmul.msk.bf16.gmra.mxu1 %vm166_vm1, %v970_v13 }
  0x29   :  { %955 = vmatmul.msk.bf16.gmra.mxu2 %vm166_vm1, %v975_v14  ;;  %960 = vmatmul.msk.bf16.gmra.mxu3 %vm166_vm1, %v980_v15 }
  0x38   :  { %946 = vmatmul.msk.bf16.gmra.mxu0 %vm166_vm1, %v966_v16  ;;  %951 = vmatmul.msk.bf16.gmra.mxu1 %vm166_vm1, %v971_v17 }
  0x39   :  { %956 = vmatmul.msk.bf16.gmra.mxu2 %vm166_vm1, %v976_v18  ;;  %961 = vmatmul.msk.bf16.gmra.mxu3 %vm166_vm1, %v981_v19 }
  0x48   :  { %947 = vmatmul.msk.bf16.gmra.mxu0 %vm166_vm1, %v967_v20  ;;  %952 = vmatmul.msk.bf16.gmra.mxu1 %vm166_vm1, %v972_v21 }
  0x49   :  { %957 = vmatmul.msk.bf16.gmra.mxu2 %vm166_vm1, %v977_v22  ;;  %962 = vmatmul.msk.bf16.gmra.mxu3 %vm166_vm1, %v982_v23 }
  0x85   :  { %v240_v26 = vpop.f32.mrf.mxu0  ;;  %v265_v27 = vpop.f32.mrf.mxu1 }
  0x86   :  { %v344_v28 = vmul.f32 %v1135_v24, %v240_v26  ;;  %v354_v29 = vmul.f32 %v1135_v24, %v265_v27 }
  0x88   :  { %v388_v30 = vadd.f32 %v1140_v25, %v344_v28  ;;  %v398_v31 = vadd.f32 %v1140_v25, %v354_v29 }
  0x8a   :  { %v428_v32 = vmax.f32 %v388_v30, 0.0  ;;  %v438_v39 = vmax.f32 %v398_v31, 0.0 }
  0x8c   :  { %v290_v33 = vpop.f32.mrf.mxu2  ;;  %v315_v34 = vpop.f32.mrf.mxu3  ;;  %v469_v42 = vsel %vm468_vm2, %v428_v32, -inf  ;;  %v539_v48 = vsel %vm468_vm2, %v438_v39, -inf }
  0x8d   :  { %v364_v35 = vmul.f32 %v1135_v24, %v290_v33  ;;  %v374_v36 = vmul.f32 %v1135_v24, %v315_v34  ;;  %v242_v37 = vpop.f32.mrf.mxu0  ;;  %v267_v38 = vpop.f32.mrf.mxu1  ;;  %v470_v47 = vrot.slane %v469_v42, 4  ;;  %v540_v56 = vrot.slane %v539_v48, 4 }
  0x8e   :  { %v345_v40 = vmul.f32 %v1135_v24, %v242_v37  ;;  %v355_v41 = vmul.f32 %v1135_v24, %v267_v38 }
  0x8f   :  { %v408_v43 = vadd.f32 %v1140_v25, %v364_v35  ;;  %v418_v44 = vadd.f32 %v1140_v25, %v374_v36  ;;  %v471_v58 = vmax.f32 %v469_v42, %v470_v47  ;;  %v541_v4 = vmax.f32 %v539_v48, %v540_v56 }
  0x90   :  { %v389_v45 = vadd.f32 %v1140_v25, %v345_v40  ;;  %v399_v46 = vadd.f32 %v1140_v25, %v355_v41 }
  0x91   :  { %v448_v49 = vmax.f32 %v408_v43, 0.0  ;;  %v458_v51 = vmax.f32 %v418_v44, 0.0  ;;  %v472_v8 = vrot.slane %v471_v58, 2  ;;  %v542_v18 = vrot.slane %v541_v4, 2 }
  0x92   :  { %v429_v50 = vmax.f32 %v389_v45, 0.0  ;;  %v439_v53 = vmax.f32 %v399_v46, 0.0 }
  0x93   :  { %v609_v59 = vsel %vm468_vm2, %v448_v49, -inf  ;;  %v679_v63 = vsel %vm468_vm2, %v458_v51, -inf  ;;  %v473_v27 = vmax.f32 %v471_v58, %v472_v8  ;;  %v543_v36 = vmax.f32 %v541_v4, %v542_v18 }
  0x94   :  { %v476_v52 = vsel %vm468_vm2, %v429_v50, -inf  ;;  %v292_v54 = vpop.f32.mrf.mxu2  ;;  %v317_v55 = vpop.f32.mrf.mxu3  ;;  %v546_v1 = vsel %vm468_vm2, %v439_v53, -inf  ;;  %v610_v5 = vrot.slane %v609_v59, 4  ;;  %v680_v9 = vrot.slane %v679_v63, 4 }
  0x95   :  { %v245_v57 = vpop.f32.mrf.mxu0  ;;  %v365_v60 = vmul.f32 %v1135_v24, %v292_v54  ;;  %v375_v61 = vmul.f32 %v1135_v24, %v317_v55  ;;  %v270_v62 = vpop.f32.mrf.mxu1  ;;  %v477_v0 = vrot.slane %v476_v52, 4  ;;  %v547_v13 = vrot.slane %v546_v1, 4 }
  0x96   :  { %v346_v6 = vmul.f32 %v1135_v24, %v245_v57  ;;  %v356_v7 = vmul.f32 %v1135_v24, %v270_v62  ;;  %v611_v19 = vmax.f32 %v609_v59, %v610_v5  ;;  %v681_v28 = vmax.f32 %v679_v63, %v680_v9 }
  0x97   :  { %v409_v2 = vadd.f32 %v1140_v25, %v365_v60  ;;  %v419_v3 = vadd.f32 %v1140_v25, %v375_v61  ;;  %v478_v12 = vmax.f32 %v476_v52, %v477_v0  ;;  %v548_v30 = vmax.f32 %v546_v1, %v547_v13 }
  0x98   :  { %v390_v14 = vadd.f32 %v1140_v25, %v346_v6  ;;  %v400_v15 = vadd.f32 %v1140_v25, %v356_v7  ;;  %v612_v37 = vrot.slane %v611_v19, 2  ;;  %v474_v43 = vrot.slane %v473_v27, 1 }
  0x99   :  { %v449_v10 = vmax.f32 %v409_v2, 0.0  ;;  %v459_v11 = vmax.f32 %v419_v3, 0.0  ;;  %v479_v29 = vrot.slane %v478_v12, 2  ;;  %v682_v44 = vrot.slane %v681_v28, 2 }
  0x9a   :  { %v430_v23 = vmax.f32 %v390_v14, 0.0  ;;  %v440_v26 = vmax.f32 %v400_v15, 0.0  ;;  %v549_v45 = vrot.slane %v548_v30, 2  ;;  %v613_v52 = vmax.f32 %v611_v19, %v612_v37 }
  0x9b   :  { %v616_v16 = vsel %vm468_vm2, %v449_v10, -inf  ;;  %v686_v21 = vsel %vm468_vm2, %v459_v11, -inf  ;;  %v480_v48 = vmax.f32 %v478_v12, %v479_v29  ;;  %v475_v60 = vmax.f32 %v473_v27, %v474_v43 }
  0x9c   :  { %v295_v17 = vpop.f32.mrf.mxu2  ;;  %v617_v20 = vrot.slane %v616_v16, 4  ;;  %v320_v22 = vpop.f32.mrf.mxu3  ;;  %v687_v32 = vrot.slane %v686_v21, 4  ;;  %v483_v33 = vsel %vm468_vm2, %v430_v23, -inf  ;;  %v553_v39 = vsel %vm468_vm2, %v440_v26, -inf }
  0x9d   :  { %v247_v31 = vpop.f32.mrf.mxu0  ;;  %v366_v34 = vmul.f32 %v1135_v24, %v295_v17  ;;  %v376_v35 = vmul.f32 %v1135_v24, %v320_v22  ;;  %v484_v46 = vrot.slane %v483_v33, 4  ;;  %v272_v47 = vpop.f32.mrf.mxu1  ;;  %v554_v53 = vrot.slane %v553_v39, 4 }
  0x9e   :  { %v618_v38 = vmax.f32 %v616_v16, %v617_v20  ;;  %v347_v42 = vmul.f32 %v1135_v24, %v247_v31  ;;  %v688_v49 = vmax.f32 %v686_v21, %v687_v32  ;;  %v357_v58 = vmul.f32 %v1135_v24, %v272_v47 }
  0x9f   :  { %v410_v40 = vadd.f32 %v1140_v25, %v366_v34  ;;  %v420_v41 = vadd.f32 %v1140_v25, %v376_v35  ;;  %v544_v61 = vrot.slane %v543_v36, 1  ;;  %v683_v62 = vmax.f32 %v681_v28, %v682_v44 }
  0xa0   :  { %v391_v51 = vadd.f32 %v1140_v25, %v347_v42  ;;  %v619_v55 = vrot.slane %v618_v38, 2  ;;  %v485_v63 = vmax.f32 %v483_v33, %v484_v46  ;;  %v481_v1 = vrot.slane %v480_v48, 1 }
  0xa1   :  { %v450_v50 = vmax.f32 %v410_v40, 0.0  ;;  %v460_v54 = vmax.f32 %v420_v41, 0.0  ;;  %v550_v2 = vmax.f32 %v548_v30, %v549_v45  ;;  %v689_v3 = vrot.slane %v688_v49, 2 }
  0xa2   :  { %v431_v57 = vmax.f32 %v391_v51, 0.0  ;;  %v555_v5 = vmax.f32 %v553_v39, %v554_v53  ;;  %v614_v9 = vrot.slane %v613_v52, 1  ;;  %v620_v10 = vmax.f32 %v618_v38, %v619_v55 }
  0xa3   :  { %v623_v56 = vsel %vm468_vm2, %v450_v50, -inf  ;;  %v693_v7 = vsel %vm468_vm2, %v460_v54, -inf  ;;  %v401_v11 = vadd.f32 %v1140_v25, %v357_v58  ;;  %v1185_v14 = vmax.f32 %v543_v36, %v544_v61 }
  0xa4   :  { %v297_v59 = vpop.f32.mrf.mxu2  ;;  %v322_v0 = vpop.f32.mrf.mxu3  ;;  %v490_v4 = vsel %vm468_vm2, %v431_v57, -inf  ;;  %v624_v6 = vrot.slane %v623_v56, 4  ;;  %v684_v15 = vrot.slane %v683_v62, 1  ;;  %v486_v16 = vrot.slane %v485_v63, 2 }
  0xa5   :  { %v367_v8 = vmul.f32 %v1135_v24, %v297_v59  ;;  %v377_v12 = vmul.f32 %v1135_v24, %v322_v0  ;;  %v250_v13 = vpop.f32.mrf.mxu0  ;;  %v491_v17 = vrot.slane %v490_v4, 4  ;;  %v482_v18 = vmax.f32 %v480_v48, %v481_v1  ;;  %v275_v36 = vpop.f32.mrf.mxu1 }
  0xa6   :  { %v551_v19 = vrot.slane %v550_v2, 1  ;;  %v694_v20 = vrot.slane %v693_v7, 4  ;;  %v690_v22 = vmax.f32 %v688_v49, %v689_v3  ;;  %v556_v23 = vrot.slane %v555_v5, 2 }
  0xa7   :  { %v421_v21 = vadd.f32 %v1140_v25, %v377_v12  ;;  %v625_v26 = vmax.f32 %v623_v56, %v624_v6  ;;  %v411_v27 = vadd.f32 %v1140_v25, %v367_v8  ;;  %v1189_v28 = vmax.f32 %v613_v52, %v614_v9 }
  0xa8   :  { %v621_v29 = vrot.slane %v620_v10, 1  ;;  %v441_v30 = vmax.f32 %v401_v11, 0.0  ;;  %v348_v31 = vmul.f32 %v1135_v24, %v250_v13  ;;  %v1192_v32 = vmax.f32 %v683_v62, %v684_v15 }
  0xa9   :  { %v487_v33 = vmax.f32 %v485_v63, %v486_v16  ;;  %v492_v34 = vmax.f32 %v490_v4, %v491_v17  ;;  %v461_v35 = vmax.f32 %v421_v21, 0.0  ;;  %v790_v37 = vsel %vm789_vm3, %v482_v18, %v475_v60 }
  0xaa   :  { %v1195_v38 = vmax.f32 %v550_v2, %v551_v19  ;;  %v695_v39 = vmax.f32 %v693_v7, %v694_v20  ;;  %v392_v40 = vadd.f32 %v1140_v25, %v348_v31  ;;  %v691_v42 = vrot.slane %v690_v22, 1 }
  0xab   :  { %v557_v43 = vmax.f32 %v555_v5, %v556_v23  ;;  %v626_v44 = vrot.slane %v625_v26, 2  ;;  %v451_v45 = vmax.f32 %v411_v27, 0.0  ;;  %v1198_v47 = vmax.f32 %v620_v10, %v621_v29 }
  0xac   :  { %v300_v41 = vpop.f32.mrf.mxu2  ;;  %v325_v46 = vpop.f32.mrf.mxu3  ;;  %v560_v48 = vsel %vm468_vm2, %v441_v30, -inf  ;;  %v432_v49 = vmax.f32 %v392_v40, 0.0  ;;  %v358_v50 = vmul.f32 %v1135_v24, %v275_v36  ;;  %v488_v51 = vrot.slane %v487_v33, 1 }
  0xad   :  { %v493_v52 = vrot.slane %v492_v34, 2  ;;  %v700_v53 = vsel %vm468_vm2, %v461_v35, -inf  ;;  %v368_v54 = vmul.f32 %v1135_v24, %v300_v41  ;;  %v696_v55 = vrot.slane %v695_v39, 2  ;;  %v252_v59 = vpop.f32.mrf.mxu0  ;;  %v277_v17 = vpop.f32.mrf.mxu1 }
  0xae   :  { %v497_v56 = vsel %vm468_vm2, %v432_v49, -inf  ;;  %v402_v57 = vadd.f32 %v1140_v25, %v358_v50  ;;  %v378_v58 = vmul.f32 %v1135_v24, %v325_v46  ;;  %v558_v60 = vrot.slane %v557_v43, 1 }
  0xaf   :  { %v627_v61 = vmax.f32 %v625_v26, %v626_v44  ;;  %v561_v62 = vrot.slane %v560_v48, 4  ;;  %v630_v63 = vsel %vm468_vm2, %v451_v45, -inf  ;;  %v701_v0 = vrot.slane %v700_v53, 4 }
  0xb0   :  { %v442_v1 = vmax.f32 %v402_v57, 0.0  ;;  %v412_v2 = vadd.f32 %v1140_v25, %v368_v54  ;;  %v422_v3 = vadd.f32 %v1140_v25, %v378_v58  ;;  %v489_v4 = vmax.f32 %v487_v33, %v488_v51 }
  0xb1   :  { %v494_v5 = vmax.f32 %v492_v34, %v493_v52  ;;  %v498_v6 = vrot.slane %v497_v56, 4  ;;  %v349_v7 = vmul.f32 %v1135_v24, %v252_v59  ;;  %v697_v8 = vmax.f32 %v695_v39, %v696_v55 }
  0xb2   :  { %v567_v9 = vsel %vm468_vm2, %v442_v1, -inf  ;;  %v452_v10 = vmax.f32 %v412_v2, 0.0  ;;  %v462_v11 = vmax.f32 %v422_v3, 0.0  ;;  %v1212_v12 = vmax.f32 %v690_v22, %v691_v42 }
  0xb3   :  { %v562_v13 = vmax.f32 %v560_v48, %v561_v62  ;;  %v631_v15 = vrot.slane %v630_v63, 4  ;;  %v393_v16 = vadd.f32 %v1140_v25, %v349_v7  ;;  %v1215_v18 = vmax.f32 %v557_v43, %v558_v60 }
  0xb4   :  { %v628_v19 = vrot.slane %v627_v61, 1  ;;  %v702_v20 = vmax.f32 %v700_v53, %v701_v0  ;;  %v637_v21 = vsel %vm468_vm2, %v452_v10, -inf  ;;  %v302_v23 = vpop.f32.mrf.mxu2  ;;  %v792_v26 = vsel %vm791_vm4, %v489_v4, %v790_v37  ;;  %v327_v41 = vpop.f32.mrf.mxu3 }
  0xb5   :  { %v495_v27 = vrot.slane %v494_v5, 1  ;;  %v499_v29 = vmax.f32 %v497_v56, %v498_v6  ;;  %v568_v30 = vrot.slane %v567_v9, 4  ;;  %v698_v31 = vrot.slane %v697_v8, 1  ;;  %v255_v54 = vpop.f32.mrf.mxu0 }
  0xb6   :  { %v707_v22 = vsel %vm468_vm2, %v462_v11, -inf  ;;  %v433_v33 = vmax.f32 %v393_v16, 0.0  ;;  %v359_v34 = vmul.f32 %v1135_v24, %v277_v17  ;;  %v563_v35 = vrot.slane %v562_v13, 2  ;;  %v280_v11 = vpop.f32.mrf.mxu1 }
  0xb7   :  { %v632_v36 = vmax.f32 %v630_v63, %v631_v15  ;;  %v638_v39 = vrot.slane %v637_v21, 4  ;;  %v369_v40 = vmul.f32 %v1135_v24, %v302_v23  ;;  %v1222_v42 = vmax.f32 %v627_v61, %v628_v19 }
  0xb8   :  { %v703_v43 = vrot.slane %v702_v20, 2  ;;  %v504_v37 = vsel %vm468_vm2, %v433_v33, -inf  ;;  %v403_v44 = vadd.f32 %v1140_v25, %v359_v34  ;;  %v496_v45 = vmax.f32 %v494_v5, %v495_v27 }
  0xb9   :  { %v500_v46 = vrot.slane %v499_v29, 2  ;;  %v569_v48 = vmax.f32 %v567_v9, %v568_v30  ;;  %v708_v49 = vrot.slane %v707_v22, 4  ;;  %v505_v50 = vrot.slane %v504_v37, 4 }
  0xba   :  { %v443_v51 = vmax.f32 %v403_v44, 0.0  ;;  %v413_v52 = vadd.f32 %v1140_v25, %v369_v40  ;;  %v379_v53 = vmul.f32 %v1135_v24, %v327_v41  ;;  %v1228_v55 = vmax.f32 %v697_v8, %v698_v31 }
  0xbb   :  { %v564_v56 = vmax.f32 %v562_v13, %v563_v35  ;;  %v633_v57 = vrot.slane %v632_v36, 2  ;;  %v639_v58 = vmax.f32 %v637_v21, %v638_v39  ;;  %v704_v59 = vmax.f32 %v702_v20, %v703_v43 }
  0xbc   :  { %v574_v60 = vsel %vm468_vm2, %v443_v51, -inf  ;;  %v453_v61 = vmax.f32 %v413_v52, 0.0  ;;  %v423_v62 = vadd.f32 %v1140_v25, %v379_v53  ;;  %v794_v63 = vsel %vm793_vm5, %v496_v45, %v792_v26  ;;  %v305_v13 = vpop.f32.mrf.mxu2 }
  0xbd   :  { %v501_v0 = vmax.f32 %v499_v29, %v500_v46  ;;  %v570_v1 = vrot.slane %v569_v48, 2  ;;  %v709_v2 = vmax.f32 %v707_v22, %v708_v49  ;;  %v506_v3 = vmax.f32 %v504_v37, %v505_v50  ;;  %v330_v22 = vpop.f32.mrf.mxu3  ;;  %v257_v37 = vpop.f32.mrf.mxu0 }
  0xbe   :  { %v644_v4 = vsel %vm468_vm2, %v453_v61, -inf  ;;  %v463_v5 = vmax.f32 %v423_v62, 0.0  ;;  %v350_v6 = vmul.f32 %v1135_v24, %v255_v54  ;;  %v565_v7 = vrot.slane %v564_v56, 1 }
  0xbf   :  { %v640_v8 = vrot.slane %v639_v58, 2  ;;  %v575_v9 = vrot.slane %v574_v60, 4  ;;  %v645_v10 = vrot.slane %v644_v4, 4  ;;  %v634_v15 = vmax.f32 %v632_v36, %v633_v57 }
  0xc0   :  { %v705_v16 = vrot.slane %v704_v59, 1  ;;  %v714_v17 = vsel %vm468_vm2, %v463_v5, -inf  ;;  %v394_v19 = vadd.f32 %v1140_v25, %v350_v6  ;;  %v502_v20 = vrot.slane %v501_v0, 1 }
  0xc1   :  { %v571_v21 = vmax.f32 %v569_v48, %v570_v1  ;;  %v710_v23 = vrot.slane %v709_v2, 2  ;;  %v646_v26 = vmax.f32 %v644_v4, %v645_v10  ;;  %v507_v27 = vrot.slane %v506_v3, 2 }
  0xc2   :  { %v434_v29 = vmax.f32 %v394_v19, 0.0  ;;  %v360_v30 = vmul.f32 %v1135_v24, %v280_v11  ;;  %v370_v31 = vmul.f32 %v1135_v24, %v305_v13  ;;  %v1239_v33 = vmax.f32 %v564_v56, %v565_v7 }
  0xc3   :  { %v641_v34 = vmax.f32 %v639_v58, %v640_v8  ;;  %v576_v35 = vmax.f32 %v574_v60, %v575_v9  ;;  %v715_v36 = vrot.slane %v714_v17, 4  ;;  %v635_v39 = vrot.slane %v634_v15, 1 }
  0xc4   :  { %v511_v40 = vsel %vm468_vm2, %v434_v29, -inf  ;;  %v404_v41 = vadd.f32 %v1140_v25, %v360_v30  ;;  %v414_v43 = vadd.f32 %v1140_v25, %v370_v31  ;;  %v706_v44 = vmax.f32 %v704_v59, %v705_v16  ;;  %v307_v8 = vpop.f32.mrf.mxu2 }
  0xc5   :  { %v503_v45 = vmax.f32 %v501_v0, %v502_v20  ;;  %v647_v46 = vrot.slane %v646_v26, 2  ;;  %v380_v48 = vmul.f32 %v1135_v24, %v330_v22  ;;  %v572_v49 = vrot.slane %v571_v21, 1 }
  0xc6   :  { %v711_v50 = vmax.f32 %v709_v2, %v710_v23  ;;  %v508_v51 = vmax.f32 %v506_v3, %v507_v27  ;;  %v512_v52 = vrot.slane %v511_v40, 4  ;;  %v642_v53 = vrot.slane %v641_v34, 1  ;;  %v282_v3 = vpop.f32.mrf.mxu1 }
  0xc7   :  { %v577_v54 = vrot.slane %v576_v35, 2  ;;  %v716_v56 = vmax.f32 %v714_v17, %v715_v36  ;;  %v351_v57 = vmul.f32 %v1135_v24, %v257_v37  ;;  %v1246_v58 = vmax.f32 %v634_v15, %v635_v39 }
  0xc8   :  { %v513_v60 = vmax.f32 %v511_v40, %v512_v52  ;;  %v444_v61 = vmax.f32 %v404_v41, 0.0  ;;  %v454_v62 = vmax.f32 %v414_v43, 0.0  ;;  %v824_v59 = vsel %vm789_vm3, %v706_v44, %v1228_v55 }
  0xc9   :  { %v796_v0 = vsel %vm795_vm6, %v503_v45, %v794_v63  ;;  %v648_v1 = vmax.f32 %v646_v26, %v647_v46  ;;  %v424_v2 = vadd.f32 %v1140_v25, %v380_v48  ;;  %v712_v4 = vrot.slane %v711_v50, 1  ;;  %v332_v26 = vpop.f32.mrf.mxu3  ;;  %v260_v45 = vpop.f32.mrf.mxu0 }
  0xca   :  { %v509_v5 = vrot.slane %v508_v51, 1  ;;  %v514_v6 = vrot.slane %v513_v60, 2  ;;  %v395_v7 = vadd.f32 %v1140_v25, %v351_v57  ;;  %v1253_v9 = vmax.f32 %v571_v21, %v572_v49 }
  0xcb   :  { %v643_v10 = vmax.f32 %v641_v34, %v642_v53  ;;  %v578_v11 = vmax.f32 %v576_v35, %v577_v54  ;;  %v717_v13 = vrot.slane %v716_v56, 2  ;;  %v581_v15 = vsel %vm468_vm2, %v444_v61, -inf }
  0xcc   :  { %v651_v55 = vsel %vm468_vm2, %v454_v62, -inf  ;;  %v435_v63 = vmax.f32 %v395_v7, 0.0  ;;  %v361_v16 = vmul.f32 %v1135_v24, %v282_v3  ;;  %v649_v17 = vrot.slane %v648_v1, 1 }
  0xcd   :  { %v515_v19 = vmax.f32 %v513_v60, %v514_v6  ;;  %v464_v20 = vmax.f32 %v424_v2, 0.0  ;;  %v371_v23 = vmul.f32 %v1135_v24, %v307_v8  ;;  %v713_v27 = vmax.f32 %v711_v50, %v712_v4 }
  0xce   :  { %v510_v29 = vmax.f32 %v508_v51, %v509_v5  ;;  %v518_v21 = vsel %vm468_vm2, %v435_v63, -inf  ;;  %v405_v30 = vadd.f32 %v1140_v25, %v361_v16  ;;  %v582_v31 = vrot.slane %v581_v15, 4 }
  0xcf   :  { %v652_v22 = vrot.slane %v651_v55, 4  ;;  %v519_v34 = vrot.slane %v518_v21, 4  ;;  %v415_v35 = vadd.f32 %v1140_v25, %v371_v23  ;;  %v579_v36 = vrot.slane %v578_v11, 1 }
  0xd0   :  { %v718_v39 = vmax.f32 %v716_v56, %v717_v13  ;;  %v381_v40 = vmul.f32 %v1135_v24, %v332_v26  ;;  %v650_v41 = vmax.f32 %v648_v1, %v649_v17  ;;  %v516_v43 = vrot.slane %v515_v19, 1  ;;  %v285_v56 = vpop.f32.mrf.mxu1 }
  0xd1   :  { %v721_v37 = vsel %vm468_vm2, %v464_v20, -inf  ;;  %v520_v44 = vmax.f32 %v518_v21, %v519_v34  ;;  %v1265_v46 = vsel %vm791_vm4, %v713_v27, %v824_v59  ;;  %v798_v48 = vsel %vm797_vm7, %v510_v29, %v796_v0  ;;  %v310_v0 = vpop.f32.mrf.mxu2 }
  0xd2   :  { %v445_v49 = vmax.f32 %v405_v30, 0.0  ;;  %v455_v50 = vmax.f32 %v415_v35, 0.0  ;;  %v583_v51 = vmax.f32 %v581_v15, %v582_v31  ;;  %v653_v52 = vmax.f32 %v651_v55, %v652_v22  ;;  %v335_v15 = vpop.f32.mrf.mxu3  ;;  %v262_v35 = vpop.f32.mrf.mxu0 }
  0xd3   :  { %v521_v53 = vrot.slane %v520_v44, 2  ;;  %v425_v54 = vadd.f32 %v1140_v25, %v381_v40  ;;  %v1269_v57 = vmax.f32 %v578_v11, %v579_v36  ;;  %v719_v60 = vrot.slane %v718_v39, 1 }
  0xd4   :  { %v722_v61 = vrot.slane %v721_v37, 4  ;;  %v352_v62 = vmul.f32 %v1135_v24, %v260_v45  ;;  %v1273_v1 = vsel %vm789_vm3, %v650_v41, %v643_v10  ;;  %v517_v59 = vmax.f32 %v515_v19, %v516_v43 }
  0xd5   :  { %v522_v2 = vmax.f32 %v520_v44, %v521_v53  ;;  %v588_v3 = vsel %vm468_vm2, %v445_v49, -inf  ;;  %v658_v4 = vsel %vm468_vm2, %v455_v50, -inf  ;;  %v362_v6 = vmul.f32 %v1135_v24, %v285_v56 }
  0xd6   :  { %v396_v5 = vadd.f32 %v1140_v25, %v352_v62  ;;  %v584_v7 = vrot.slane %v583_v51, 2  ;;  %v654_v8 = vrot.slane %v653_v52, 2  ;;  %v465_v13 = vmax.f32 %v425_v54, 0.0 }
  0xd7   :  { %v523_v11 = vrot.slane %v522_v2, 1  ;;  %v723_v55 = vmax.f32 %v721_v37, %v722_v61  ;;  %v406_v63 = vadd.f32 %v1140_v25, %v362_v6  ;;  %v372_v16 = vmul.f32 %v1135_v24, %v310_v0 }
  0xd8   :  { %v436_v10 = vmax.f32 %v396_v5, 0.0  ;;  %v800_v17 = vsel %vm799_vm8, %v517_v59, %v798_v48  ;;  %v589_v20 = vrot.slane %v588_v3, 4  ;;  %v659_v23 = vrot.slane %v658_v4, 4  ;;  %v287_v62 = vpop.f32.mrf.mxu1 }
  0xd9   :  { %v524_v19 = vmax.f32 %v522_v2, %v523_v11  ;;  %v446_v27 = vmax.f32 %v406_v63, 0.0  ;;  %v416_v29 = vadd.f32 %v1140_v25, %v372_v16  ;;  %v382_v21 = vmul.f32 %v1135_v24, %v335_v15 }
  0xda   :  { %v525_v26 = vsel %vm468_vm2, %v436_v10, -inf  ;;  %v585_v30 = vmax.f32 %v583_v51, %v584_v7  ;;  %v655_v31 = vmax.f32 %v653_v52, %v654_v8  ;;  %v728_v34 = vsel %vm468_vm2, %v465_v13, -inf }
  0xdb   :  { %v802_v22 = vsel %vm801_vm9, %v524_v19, %v800_v17  ;;  %v526_v36 = vrot.slane %v525_v26, 4  ;;  %v595_v40 = vsel %vm468_vm2, %v446_v27, -inf  ;;  %v456_v41 = vmax.f32 %v416_v29, 0.0  ;;  %v337_v17 = vpop.f32.mrf.mxu3 }
  0xdc   :  { %836 = vst.msk [vmem:[#allocation2] sm:$0xff] %vm468_vm2, %v802_v22  ;;  %v426_v43 = vadd.f32 %v1140_v25, %v382_v21  ;;  %v720_v37 = vmax.f32 %v718_v39, %v719_v60  ;;  %v724_v44 = vrot.slane %v723_v55, 2  ;;  %v590_v45 = vmax.f32 %v588_v3, %v589_v20  ;;  %v312_v60 = vpop.f32.mrf.mxu2 }
  0xdd   :  { %v596_v48 = vrot.slane %v595_v40, 4  ;;  %v660_v49 = vmax.f32 %v658_v4, %v659_v23  ;;  %v665_v50 = vsel %vm468_vm2, %v456_v41, -inf  ;;  %v353_v52 = vmul.f32 %v1135_v24, %v262_v35 }
  0xde   :  { %v466_v51 = vmax.f32 %v426_v43, 0.0  ;;  %v586_v53 = vrot.slane %v585_v30, 1  ;;  %v656_v54 = vrot.slane %v655_v31, 1  ;;  %v729_v56 = vrot.slane %v728_v34, 4 }
  0xdf   :  { %v527_v61 = vmax.f32 %v525_v26, %v526_v36  ;;  %v597_v59 = vmax.f32 %v595_v40, %v596_v48  ;;  %v666_v2 = vrot.slane %v665_v50, 4  ;;  %v397_v39 = vadd.f32 %v1140_v25, %v353_v52 }
  0xe0   :  { %v735_v0 = vsel %vm468_vm2, %v466_v51, -inf  ;;  %v1296_v3 = vsel %vm793_vm5, %v720_v37, %v1265_v46  ;;  %v725_v4 = vmax.f32 %v723_v55, %v724_v44  ;;  %v591_v5 = vrot.slane %v590_v45, 2 }
  0xe1   :  { %v736_v6 = vrot.slane %v735_v0, 4  ;;  %v661_v7 = vrot.slane %v660_v49, 2  ;;  %v667_v8 = vmax.f32 %v665_v50, %v666_v2  ;;  %v437_v11 = vmax.f32 %v397_v39, 0.0 }
  0xe2   :  { %v363_v13 = vmul.f32 %v1135_v24, %v287_v62  ;;  %v587_v15 = vmax.f32 %v585_v30, %v586_v53  ;;  %v657_v10 = vmax.f32 %v655_v31, %v656_v54  ;;  %v528_v63 = vrot.slane %v527_v61, 2 }
  0xe3   :  { %v373_v16 = vmul.f32 %v1135_v24, %v312_v60  ;;  %v730_v19 = vmax.f32 %v728_v34, %v729_v56  ;;  %v598_v20 = vrot.slane %v597_v59, 2  ;;  %v532_v23 = vsel %vm468_vm2, %v437_v11, -inf }
  0xe4   :  { %v407_v46 = vadd.f32 %v1140_v25, %v363_v13  ;;  %v592_v55 = vmax.f32 %v590_v45, %v591_v5  ;;  %v737_v26 = vmax.f32 %v735_v0, %v736_v6  ;;  %v533_v27 = vrot.slane %v532_v23, 4 }
  0xe5   :  { %v417_v29 = vadd.f32 %v1140_v25, %v373_v16  ;;  %v662_v21 = vmax.f32 %v660_v49, %v661_v7  ;;  %v668_v22 = vrot.slane %v667_v8, 2  ;;  %v383_v30 = vmul.f32 %v1135_v24, %v337_v17 }
  0xe6   :  { %v447_v35 = vmax.f32 %v407_v46, 0.0  ;;  %v726_v31 = vrot.slane %v725_v4, 1  ;;  %v529_v36 = vmax.f32 %v527_v61, %v528_v63  ;;  %v534_v40 = vmax.f32 %v532_v23, %v533_v27 }
  0xe7   :  { %v457_v41 = vmax.f32 %v417_v29, 0.0  ;;  %v731_v34 = vrot.slane %v730_v19, 2  ;;  %v599_v43 = vmax.f32 %v597_v59, %v598_v20  ;;  %v427_v44 = vadd.f32 %v1140_v25, %v383_v30 }
  0xe8   :  { %v602_v37 = vsel %vm468_vm2, %v447_v35, -inf  ;;  %v593_v45 = vrot.slane %v592_v55, 1  ;;  %v738_v48 = vrot.slane %v737_v26, 2  ;;  %v535_v50 = vrot.slane %v534_v40, 2 }
  0xe9   :  { %v603_v51 = vrot.slane %v602_v37, 4  ;;  %v663_v52 = vrot.slane %v662_v21, 1  ;;  %v669_v49 = vmax.f32 %v667_v8, %v668_v22  ;;  %v672_v53 = vsel %vm468_vm2, %v457_v41, -inf }
  0xea   :  { %v467_v54 = vmax.f32 %v427_v44, 0.0  ;;  %v530_v24 = vrot.slane %v529_v36, 1  ;;  %v536_v56 = vmax.f32 %v534_v40, %v535_v50  ;;  %v673_v62 = vrot.slane %v672_v53, 4 }
  0xeb   :  { %v604_v61 = vmax.f32 %v602_v37, %v603_v51  ;;  %v818_v59 = vsel %vm791_vm4, %v657_v10, %v1273_v1  ;;  %v732_v2 = vmax.f32 %v730_v19, %v731_v34  ;;  %v600_v0 = vrot.slane %v599_v43, 1 }
  0xec   :  { %v742_v25 = vsel %vm468_vm2, %v467_v54, -inf  ;;  %v739_v39 = vmax.f32 %v737_v26, %v738_v48  ;;  %v537_v60 = vrot.slane %v536_v56, 1  ;;  %v674_v6 = vmax.f32 %v672_v53, %v673_v62 }
  0xed   :  { %v605_v5 = vrot.slane %v604_v61, 2  ;;  %v594_v7 = vmax.f32 %v592_v55, %v593_v45  ;;  %v664_v8 = vmax.f32 %v662_v21, %v663_v52  ;;  %v670_v11 = vrot.slane %v669_v49, 1 }
  0xee   :  { %v743_v13 = vrot.slane %v742_v25, 4  ;;  %v531_v63 = vmax.f32 %v529_v36, %v530_v24  ;;  %v538_v16 = vmax.f32 %v536_v56, %v537_v60  ;;  %v675_v20 = vrot.slane %v674_v6, 2 }
  0xef   :  { %v606_v17 = vmax.f32 %v604_v61, %v605_v5  ;;  %v727_v23 = vmax.f32 %v725_v4, %v726_v31  ;;  %v733_v46 = vrot.slane %v732_v2, 1  ;;  %v601_v27 = vmax.f32 %v599_v43, %v600_v0 }
  0xf0   :  { %v744_v1 = vmax.f32 %v742_v25, %v743_v13  ;;  %v740_v10 = vrot.slane %v739_v39, 1  ;;  %v803_v19 = vsel %vm789_vm3, %v538_v16, %v531_v63  ;;  %v676_v26 = vmax.f32 %v674_v6, %v675_v20 }
  0xf1   :  { %v607_v29 = vrot.slane %v606_v17, 1  ;;  %v810_v22 = vsel %vm789_vm3, %v594_v7, %v587_v15  ;;  %v671_v35 = vmax.f32 %v669_v49, %v670_v11  ;;  %v804_v55 = vsel %vm791_vm4, %v1185_v14, %v803_v19 }
  0xf2   :  { %v745_v21 = vrot.slane %v744_v1, 2  ;;  %v819_v30 = vsel %vm793_vm5, %v664_v8, %v818_v59  ;;  %v805_v4 = vsel %vm793_vm5, %v1195_v38, %v804_v55  ;;  %v677_v36 = vrot.slane %v676_v26, 1 }
  0xf3   :  { %v608_v31 = vmax.f32 %v606_v17, %v607_v29  ;;  %v734_v40 = vmax.f32 %v732_v2, %v733_v46  ;;  %v811_v41 = vsel %vm791_vm4, %v601_v27, %v810_v22  ;;  %v806_v34 = vsel %vm795_vm6, %v1215_v18, %v805_v4 }
  0xf4   :  { %v746_v43 = vmax.f32 %v744_v1, %v745_v21  ;;  %v741_v15 = vmax.f32 %v739_v39, %v740_v10  ;;  %v807_v37 = vsel %vm797_vm7, %v1239_v33, %v806_v34  ;;  %v678_v44 = vmax.f32 %v676_v26, %v677_v36 }
  0xf5   :  { %v812_v14 = vsel %vm793_vm5, %v608_v31, %v811_v41  ;;  %v820_v45 = vsel %vm795_vm6, %v671_v35, %v819_v30  ;;  %v808_v38 = vsel %vm799_vm8, %v1253_v9, %v807_v37  ;;  %v827_v18 = vsel %vm795_vm6, %v727_v23, %v1296_v3 }
  0xf6   :  { %v813_v48 = vsel %vm795_vm6, %v1189_v28, %v812_v14  ;;  %v747_v50 = vrot.slane %v746_v43, 1  ;;  %v821_v51 = vsel %vm797_vm7, %v678_v44, %v820_v45  ;;  %v809_v9 = vsel %vm801_vm9, %v1269_v57, %v808_v38 }
  0xf7   :  { %v814_v33 = vsel %vm797_vm7, %v1198_v47, %v813_v48  ;;  %v828_v28 = vsel %vm797_vm7, %v734_v40, %v827_v18  ;;  %v822_v49 = vsel %vm799_vm8, %v1192_v32, %v821_v51  ;;  %837 = vst.msk [vmem:[#allocation2 + $0x8] sm:$0xff] %vm468_vm2, %v809_v9 }
  0xf8   :  { %v815_v52 = vsel %vm799_vm8, %v1222_v42, %v814_v33  ;;  %v748_v53 = vmax.f32 %v746_v43, %v747_v50  ;;  %v829_v3 = vsel %vm799_vm8, %v741_v15, %v828_v28  ;;  %v823_v54 = vsel %vm801_vm9, %v1212_v12, %v822_v49 }
  0xf9   :  { %v816_v47 = vsel %vm801_vm9, %v1246_v58, %v815_v52  ;;  %839 = vst.msk [vmem:[#allocation2 + $0x18] sm:$0xff] %vm468_vm2, %v823_v54 }
  0xfa   :  { %838 = vst.msk [vmem:[#allocation2 + $0x10] sm:$0xff] %vm468_vm2, %v816_v47  ;;  %v830_v42 = vsel %vm801_vm9, %v748_v53, %v829_v3 }
  0xfb   :  { %840 = vst.msk [vmem:[#allocation2 + $0x20] sm:$0xff] %vm468_vm2, %v830_v42 }
  0xfc   :  { %853 = dma.vmem_to_hbm [thread:$0]  %s846_s2, 640, %s848_s10, [#allocation3], %s1019_s4, %s1019_s4, %s1020_s11  }
  0xfd   :  { %1016 = dma.done.wait [#allocation3], 640  }
  0xfe   :  { %1017 = vsyncadd [#allocation3], 4294966656 }
  0xff   :  { %858 = vsyncpa [#allocation3], 1 }

</bundles_post_ra>
